<compile_context>
chip_gen: v5e
topology: v5e:2x2
jax: 0.10.0
libtpu: 0.0.40
codegen_flags: <defaults>
</compile_context>

<pallas_src>
import functools

import jax
import jax.numpy as jnp
from jax.experimental import pallas as pl
from jax.experimental.pallas import tpu as pltpu


def _spatial_attention_kernel(x_ref, w1_ref, bias_ref, w2_ref, b2_ref,
                              out_ref, att_ref):
    # x_ref:    (1, C, tP)  pixel tile, pixels on lanes
    # w1_ref:   (D, C)      conv1 weight with BN scale folded in (matmul dtype)
    # bias_ref: (D, 1)      folded bias = b1*bn_scale + bn_bias   (f32)
    # w2_ref:   (D, 1)      conv2 weight (as a column)            (f32)
    # b2_ref:   (1,)        conv2 bias, SMEM scalar
    x = x_ref[0]                                       # (C, tP)
    if x.dtype != w1_ref.dtype:
        # Cast the activation tile in-kernel (VPU) so the bf16 MXU rate is
        # reached without an extra wrapper-side HBM conversion pass.
        x = x.astype(w1_ref.dtype)

    # conv1 (1x1) + folded BatchNorm: (D, C) @ (C, tP) on the MXU, f32 acc.
    h = jnp.dot(w1_ref[...], x, preferred_element_type=jnp.float32)
    h = h + bias_ref[...]                              # (D, tP), f32

    # F.normalize(p=2, dim=channel): channel is the sublane axis here.
    # rsqrt(max(sumsq, 1e-24)) == 1 / max(sqrt(sumsq), 1e-12).
    sumsq = jnp.sum(h * h, axis=0, keepdims=True)      # (1, tP)
    inv = jax.lax.rsqrt(jnp.maximum(sumsq, 1e-24))     # (1, tP)

    # ReLU -> conv2 (1x1, D -> 1): VPU multiply + sublane reduction.
    a = jnp.maximum(h, 0.0)
    s = jnp.sum(a * w2_ref[...], axis=0, keepdims=True) + b2_ref[0]   # (1, tP)

    # Softplus(beta=1, threshold=20): x if x > 20 else log(1 + exp(x)).
    att = jnp.where(s > 20.0, s, jnp.log1p(jnp.exp(jnp.minimum(s, 20.0))))

    # Fused attention scale: one (D,tP) multiply instead of fmap_norm + att*.
    scale = att * inv                                  # (1, tP)
    out_ref[0] = (h * scale).astype(out_ref.dtype)     # (D, tP) lane-dense
    att_ref[0] = att.astype(att_ref.dtype)             # (1, tP) lane-dense


def _vmem_plan():
    """Per-generation VMEM planning.

    Returns (tile_budget_bytes, vmem_limit_bytes): the former is what
    _choose_tp sizes tiles against (conservative, leaves headroom for compiler
    scratch); the latter is handed to Mosaic so the scoped default
    (16 MiB v5e / 32 MiB v6e,v7x) does not reject the chosen tiles.
    """
    cap = 64 << 20   # safe fallback (matches v7x per-core VMEM)
    try:
        cap = int(getattr(pltpu.get_tpu_info(), "vmem_capacity_bytes", cap))
    except Exception:
        pass
    budget = max(8 << 20, min(int(cap * 0.35), 44 << 20))
    limit = min(cap, max(budget + (16 << 20), min(int(cap * 0.75), 96 << 20)))
    return budget, limit


def _choose_tp(hw, c, d, tp_request, *, x_itemsize, out_itemsize, w_itemsize,
               vmem_budget_bytes, min_pixel_tiles=1):
    """Pick a pixel-tile width: a multiple of 128 that divides the 128-padded
    pixel count (so there is no large pad / output-slice round trip) and whose
    *honest* VMEM footprint fits the budget:
      * double-buffered x / out / att tiles at their real itemsizes,
      * weights counted double-buffered (conservative even with Buffered(1)),
      * in-kernel f32 intermediates (h, relu(h), pre-cast output) ~ 3*D*tP*4.
    """
    n128 = -(-hw // 128)                       # pixel chunks of 128 lanes
    max_chunks = max(1, min(tp_request // 128, n128))

    def footprint(t):
        io = 2 * t * (c * x_itemsize + (d + 1) * out_itemsize)
        weights = 2 * (d * c * w_itemsize + 2 * d * 4)
        intermediates = 3 * d * t * 4 + 4 * t * 4
        return io + weights + intermediates

    for chunks in range(max_chunks, 0, -1):
        if n128 % chunks:
            continue
        if chunks != 1 and (n128 // chunks) < min_pixel_tiles:
            continue
        if footprint(chunks * 128) <= vmem_budget_bytes:
            return chunks * 128
    return 128


@functools.partial(
    jax.jit, static_argnames=("tp", "matmul_dtype", "single_buffer_weights"))
def spatial_attention_2d(x_nchw, params, *, tp=2048,
                         matmul_dtype=jnp.bfloat16,
                         single_buffer_weights=True):
    """Forward pass of SpatialAttention2d (with_aspp=False), eval-mode BN.

    x_nchw: (B, C, H, W)
    returns: (out (B, D, H, W), att_score (B, 1, H, W))
    """
    B, C, H, W = x_nchw.shape
    w1, b1, gamma, beta, run_mean, run_var, eps, w2, b2 = (
        params["w1"], params["b1"], params["gamma"], params["beta"],
        params["run_mean"], params["run_var"], params["eps"],
        params["w2"], params["b2"])
    D = w1.shape[1]
    HW = H * W
    out_dtype = x_nchw.dtype
    mm_dtype = jnp.dtype(matmul_dtype)

    budget, vmem_limit = _vmem_plan()
    tp_eff = _choose_tp(
        HW, C, D, tp,
        x_itemsize=x_nchw.dtype.itemsize,
        out_itemsize=jnp.dtype(out_dtype).itemsize,
        w_itemsize=mm_dtype.itemsize,
        vmem_budget_bytes=budget,
        # v7x has 2 TensorCores: a B==1 call should still yield >=2 parallel
        # grid steps so both cores get work (harmless on single-TC chips).
        min_pixel_tiles=2 if B == 1 else 1)
    n128 = -(-HW // 128)
    HW_pad = n128 * 128

    # NCHW -> (B, C, H*W): pure reshape, no transpose.  Any padding is only up
    # to the next multiple of 128 (ragged tail), never a full tile.
    x_flat = x_nchw.reshape(B, C, HW)
    if HW_pad != HW:
        x_flat = jnp.pad(x_flat, ((0, 0), (0, 0), (0, HW_pad - HW)))

    # Fold BatchNorm (inference) into conv1 weight + a single f32 bias.
    bn_scale = gamma / jnp.sqrt(run_var + eps)          # (D,)
    bn_bias = beta - run_mean * bn_scale                # (D,)
    w1_fold = (w1.T * bn_scale[:, None]).astype(mm_dtype)            # (D, C)
    bias_fold = (b1 * bn_scale + bn_bias).reshape(D, 1).astype(jnp.float32)
    w2_col = w2.reshape(D, 1).astype(jnp.float32)
    b2_s = b2.reshape(1).astype(jnp.float32)

    # Constant-index weights -> single VMEM buffer (reclaims VMEM for wider
    # pixel tiles); fall back to default double buffering if unsupported.
    wkw = dict(pipeline_mode=pl.Buffered(1)) if single_buffer_weights else {}

    grid = (B, HW_pad // tp_eff)
    out_flat, att_flat = pl.pallas_call(
        _spatial_attention_kernel,
        out_shape=(
            jax.ShapeDtypeStruct((B, D, HW_pad), out_dtype),
            jax.ShapeDtypeStruct((B, 1, HW_pad), out_dtype),
        ),
        grid_spec=pltpu.PrefetchScalarGridSpec(
            num_scalar_prefetch=0,
            grid=grid,
            in_specs=[
                pl.BlockSpec((1, C, tp_eff), lambda b, p: (b, 0, p)),   # x tile
                pl.BlockSpec((D, C), lambda b, p: (0, 0), **wkw),       # w1 (BN folded)
                pl.BlockSpec((D, 1), lambda b, p: (0, 0), **wkw),       # folded bias
                pl.BlockSpec((D, 1), lambda b, p: (0, 0), **wkw),       # w2 column
                pl.BlockSpec(memory_space=pltpu.MemorySpace.SMEM),      # b2 scalar
            ],
            out_specs=[
                pl.BlockSpec((1, D, tp_eff), lambda b, p: (b, 0, p)),
                pl.BlockSpec((1, 1, tp_eff), lambda b, p: (b, 0, p)),
            ],
        ),
        compiler_params=pltpu.CompilerParams(
            dimension_semantics=("parallel", "parallel"),
            vmem_limit_bytes=vmem_limit),
    )(x_flat, w1_fold, bias_fold, w2_col, b2_s)

    if HW_pad != HW:
        out_flat = out_flat[:, :, :HW]
        att_flat = att_flat[:, :, :HW]
    out = out_flat.reshape(B, D, H, W)
    att = att_flat.reshape(B, 1, H, W)
    return out, att


def _run(x, params, **kw):
    """Call the kernel; if single-buffered weights (pl.Buffered(1)) are not
    supported by this jax version, retry with the default double buffering."""
    try:
        return spatial_attention_2d(x, params, **kw)
    except Exception:
        return spatial_attention_2d(x, params, single_buffer_weights=False, **kw)


def _reference(x_nchw, params):
    """Pure-JAX reference of the same forward pass (for a sanity check)."""
    w1, b1 = params["w1"], params["b1"]
    gamma, beta = params["gamma"], params["beta"]
    mean, var, eps = params["run_mean"], params["run_var"], params["eps"]
    w2, b2 = params["w2"], params["b2"]
    B, C, H, W = x_nchw.shape
    D = w1.shape[1]
    x = jnp.transpose(x_nchw, (0, 2, 3, 1)).reshape(-1, C)
    h = x @ w1 + b1
    h = (h - mean) / jnp.sqrt(var + eps) * gamma + beta
    fmn = h / jnp.maximum(jnp.linalg.norm(h, axis=-1, keepdims=True), 1e-12)
    a = jnp.maximum(h, 0.0)
    s = a @ w2.reshape(D, 1) + b2.reshape(1, 1)
    att = jnp.where(s > 20.0, s, jnp.log1p(jnp.exp(jnp.minimum(s, 20.0))))
    out = att * fmn
    out = jnp.transpose(out.reshape(B, H, W, D), (0, 3, 1, 2))
    att = jnp.transpose(att.reshape(B, H, W, 1), (0, 3, 1, 2))
    return out, att


def make_params(key, in_c, s3_dim):
    """Deterministic synthetic parameters (matches module __init__ shapes)."""
    ks = jax.random.split(key, 8)
    # conv1: nn.Conv2d(in_c, s3_dim, 1) -> weight (s3_dim, in_c, 1, 1); stored
    # here directly as the (in_c, s3_dim) matmul matrix.
    w1 = jax.random.normal(ks[0], (in_c, s3_dim), jnp.float32) * 0.1
    b1 = jax.random.normal(ks[1], (s3_dim,), jnp.float32) * 0.05
    # BatchNorm2d(s3_dim) running stats + affine params
    gamma = 1.0 + 0.1 * jax.random.normal(ks[2], (s3_dim,), jnp.float32)
    beta = 0.05 * jax.random.normal(ks[3], (s3_dim,), jnp.float32)
    run_mean = 0.1 * jax.random.normal(ks[4], (s3_dim,), jnp.float32)
    run_var = jnp.abs(1.0 + 0.1 * jax.random.normal(ks[5], (s3_dim,), jnp.float32))
    # conv2: nn.Conv2d(s3_dim, 1, 1) -> weight (1, s3_dim, 1, 1)
    w2 = jax.random.normal(ks[6], (s3_dim,), jnp.float32) * 0.1
    b2 = jax.random.normal(ks[7], (1,), jnp.float32) * 0.05
    return dict(w1=w1, b1=b1, gamma=gamma, beta=beta, run_mean=run_mean,
                run_var=run_var, eps=jnp.float32(1e-5), w2=w2, b2=b2)


if __name__ == "__main__":
    key = jax.random.PRNGKey(0)
    k_x, k_p = jax.random.split(key)

    B, C, H, W = 2, 4, 16, 16   # input:  (b, in_c, h, w)
    S3_DIM = 8                  # cfg.MODEL.S3_DIM (small synthetic value)

    x = jax.random.normal(k_x, (B, C, H, W), jnp.float32)
    params = make_params(k_p, C, S3_DIM)
    ref_out, ref_att = _reference(x, params)

    # 1) exact-path check: f32 matmul, tight tolerance.
    out32, att32 = _run(x, params, matmul_dtype=jnp.float32)
    out32, att32 = jax.block_until_ready((out32, att32))
    assert out32.shape == (B, S3_DIM, H, W)
    assert att32.shape == (B, 1, H, W)
    assert jnp.allclose(out32, ref_out, atol=1e-4, rtol=1e-4)
    assert jnp.allclose(att32, ref_att, atol=1e-4, rtol=1e-4)

    # 2) default fast path: bf16 MXU matmul (f32 accumulate, f32 post-math).
    #    bf16 weight/activation rounding -> looser tolerance.
    out, att = _run(x, params)
    out, att = jax.block_until_ready((out, att))
    assert out.shape == (B, S3_DIM, H, W)
    assert att.shape == (B, 1, H, W)
    assert jnp.allclose(out, ref_out, atol=3e-2, rtol=3e-2)
    assert jnp.allclose(att, ref_att, atol=3e-2, rtol=3e-2)

    print("KERNEL_OK")
</pallas_src>

<mosaic_0001>
module attributes {stable_mosaic.version = 11 : i64} {
  func.func @_spatial_attention_kernel(%arg0: i32, %arg1: i32, %arg2: memref<1x4x256xf32, #tpu.memory_space<vmem>>, %arg3: memref<8x4xf32, #tpu.memory_space<vmem>>, %arg4: memref<8x1xf32, #tpu.memory_space<vmem>>, %arg5: memref<8x1xf32, #tpu.memory_space<vmem>>, %arg6: memref<1xf32, #tpu.memory_space<smem>>, %arg7: memref<1x8x256xf32, #tpu.memory_space<vmem>>, %arg8: memref<1x1x256xf32, #tpu.memory_space<vmem>>) attributes {dimension_semantics = [#tpu.dimension_semantics<parallel>, #tpu.dimension_semantics<parallel>], iteration_bounds = array<i64: 2, 1>, scalar_prefetch = 0 : i64, scratch_operands = 0 : i64, tpu.core_type = #tpu.core_type<tc>, window_params = [{transform_indices = @transform_0, window_bounds = array<i64: 1, 4, 256>}, {pipeline_mode = #tpu.pipeline_mode<synchronous>, transform_indices = @transform_1, window_bounds = array<i64: 8, 4>}, {pipeline_mode = #tpu.pipeline_mode<synchronous>, transform_indices = @transform_2, window_bounds = array<i64: 8, 1>}, {pipeline_mode = #tpu.pipeline_mode<synchronous>, transform_indices = @transform_3, window_bounds = array<i64: 8, 1>}, {transform_indices = @transform_4, window_bounds = array<i64: 1>}, {transform_indices = @transform_5, window_bounds = array<i64: 1, 8, 256>}, {transform_indices = @transform_6, window_bounds = array<i64: 1, 1, 256>}]} {
    %c0 = arith.constant 0 : index
    %c0_0 = arith.constant 0 : index
    %c0_1 = arith.constant 0 : index
    %0 = vector.load %arg2[%c0, %c0_0, %c0_1] : memref<1x4x256xf32, #tpu.memory_space<vmem>>, vector<1x4x256xf32>
    %1 = vector.shape_cast %0 : vector<1x4x256xf32> to vector<4x256xf32>
    %c0_2 = arith.constant 0 : index
    %c0_3 = arith.constant 0 : index
    %2 = vector.load %arg3[%c0_2, %c0_3] : memref<8x4xf32, #tpu.memory_space<vmem>>, vector<8x4xf32>
    %cst = arith.constant dense<0.000000e+00> : vector<8x256xf32>
    %3 = tpu.matmul %2, %1, %cst {dimension_numbers = #tpu.dot_dimension_numbers<[1], [0], [0], [1], [0, 0, 1, 1], [], []>} : vector<8x4xf32>, vector<4x256xf32>, vector<8x256xf32> -> vector<8x256xf32>
    %c0_4 = arith.constant 0 : index
    %c0_5 = arith.constant 0 : index
    %4 = vector.load %arg4[%c0_4, %c0_5] : memref<8x1xf32, #tpu.memory_space<vmem>>, vector<8x1xf32>
    %5 = vector.broadcast %4 : vector<8x1xf32> to vector<8x256xf32>
    %6 = arith.addf %3, %5 : vector<8x256xf32>
    %7 = arith.mulf %6, %6 : vector<8x256xf32>
    %cst_6 = arith.constant dense<0.000000e+00> : vector<256xf32>
    %8 = vector.multi_reduction <add>, %7, %cst_6 [0] : vector<8x256xf32> to vector<256xf32>
    %9 = vector.shape_cast %8 : vector<256xf32> to vector<1x256xf32>
    %cst_7 = arith.constant 1.000000e-24 : f32
    %10 = vector.broadcast %cst_7 : f32 to vector<1x256xf32>
    %11 = arith.maximumf %9, %10 : vector<1x256xf32>
    %12 = math.rsqrt %11 : vector<1x256xf32>
    %cst_8 = arith.constant 0.000000e+00 : f32
    %13 = vector.broadcast %cst_8 : f32 to vector<8x256xf32>
    %14 = arith.maximumf %6, %13 : vector<8x256xf32>
    %c0_9 = arith.constant 0 : index
    %c0_10 = arith.constant 0 : index
    %15 = vector.load %arg5[%c0_9, %c0_10] : memref<8x1xf32, #tpu.memory_space<vmem>>, vector<8x1xf32>
    %16 = vector.broadcast %15 : vector<8x1xf32> to vector<8x256xf32>
    %17 = arith.mulf %14, %16 : vector<8x256xf32>
    %cst_11 = arith.constant dense<0.000000e+00> : vector<256xf32>
    %18 = vector.multi_reduction <add>, %17, %cst_11 [0] : vector<8x256xf32> to vector<256xf32>
    %19 = vector.shape_cast %18 : vector<256xf32> to vector<1x256xf32>
    %c0_12 = arith.constant 0 : index
    %20 = memref.load %arg6[%c0_12] : memref<1xf32, #tpu.memory_space<smem>>
    %21 = vector.broadcast %20 : f32 to vector<1x256xf32>
    %22 = arith.addf %19, %21 : vector<1x256xf32>
    %cst_13 = arith.constant 2.000000e+01 : f32
    %23 = vector.broadcast %cst_13 : f32 to vector<1x256xf32>
    %24 = arith.cmpf ogt, %22, %23 : vector<1x256xf32>
    %cst_14 = arith.constant 2.000000e+01 : f32
    %25 = vector.broadcast %cst_14 : f32 to vector<1x256xf32>
    %26 = arith.minimumf %22, %25 : vector<1x256xf32>
    %27 = math.exp %26 : vector<1x256xf32>
    %28 = math.log1p %27 : vector<1x256xf32>
    %29 = arith.select %24, %22, %28 : vector<1x256xi1>, vector<1x256xf32>
    %30 = arith.mulf %29, %12 : vector<1x256xf32>
    %31 = vector.broadcast %30 : vector<1x256xf32> to vector<8x256xf32>
    %32 = arith.mulf %6, %31 : vector<8x256xf32>
    %c0_15 = arith.constant 0 : index
    %c0_16 = arith.constant 0 : index
    %c0_17 = arith.constant 0 : index
    %33 = vector.load %arg7[%c0_15, %c0_16, %c0_17] : memref<1x8x256xf32, #tpu.memory_space<vmem>>, vector<1x8x256xf32>
    %34 = vector.shape_cast %33 : vector<1x8x256xf32> to vector<8x256xf32>
    %35 = vector.shape_cast %32 : vector<8x256xf32> to vector<1x8x256xf32>
    tpu.vector_store %arg7[%c0_15, %c0_16, %c0_17], %35 {strides = array<i32>} : memref<1x8x256xf32, #tpu.memory_space<vmem>>, vector<1x8x256xf32>,
    %c0_18 = arith.constant 0 : index
    %c0_19 = arith.constant 0 : index
    %c0_20 = arith.constant 0 : index
    %36 = vector.load %arg8[%c0_18, %c0_19, %c0_20] : memref<1x1x256xf32, #tpu.memory_space<vmem>>, vector<1x1x256xf32>
    %37 = vector.shape_cast %36 : vector<1x1x256xf32> to vector<1x256xf32>
    %38 = vector.shape_cast %29 : vector<1x256xf32> to vector<1x1x256xf32>
    tpu.vector_store %arg8[%c0_18, %c0_19, %c0_20], %38 {strides = array<i32>} : memref<1x1x256xf32, #tpu.memory_space<vmem>>, vector<1x1x256xf32>,
    return
  }
  func.func @transform_0(%arg0: i32, %arg1: i32) -> (i32, i32, i32) {
    %c0_i32 = arith.constant 0 : i32
    %c0_i32_0 = arith.constant 0 : i32
    return %arg0, %c0_i32, %arg1 : i32, i32, i32
  }
  func.func @transform_1(%arg0: i32, %arg1: i32) -> (i32, i32) {
    %c0_i32 = arith.constant 0 : i32
    %c0_i32_0 = arith.constant 0 : i32
    %c0_i32_1 = arith.constant 0 : i32
    return %c0_i32, %c0_i32_0 : i32, i32
  }
  func.func @transform_2(%arg0: i32, %arg1: i32) -> (i32, i32) {
    %c0_i32 = arith.constant 0 : i32
    %c0_i32_0 = arith.constant 0 : i32
    %c0_i32_1 = arith.constant 0 : i32
    return %c0_i32, %c0_i32_0 : i32, i32
  }
  func.func @transform_3(%arg0: i32, %arg1: i32) -> (i32, i32) {
    %c0_i32 = arith.constant 0 : i32
    %c0_i32_0 = arith.constant 0 : i32
    %c0_i32_1 = arith.constant 0 : i32
    return %c0_i32, %c0_i32_0 : i32, i32
  }
  func.func @transform_4(%arg0: i32, %arg1: i32) -> i32 {
    %c0_i32 = arith.constant 0 : i32
    %c0_i32_0 = arith.constant 0 : i32
    return %c0_i32 : i32
  }
  func.func @transform_5(%arg0: i32, %arg1: i32) -> (i32, i32, i32) {
    %c0_i32 = arith.constant 0 : i32
    %c0_i32_0 = arith.constant 0 : i32
    return %arg0, %c0_i32, %arg1 : i32, i32, i32
  }
  func.func @transform_6(%arg0: i32, %arg1: i32) -> (i32, i32, i32) {
    %c0_i32 = arith.constant 0 : i32
    %c0_i32_0 = arith.constant 0 : i32
    return %arg0, %c0_i32, %arg1 : i32, i32, i32
  }
}

module attributes {stable_mosaic.version = 11 : i64} {
  func.func @_spatial_attention_kernel(%arg0: i32, %arg1: i32, %arg2: memref<1x4x256xf32, #tpu.memory_space<vmem>>, %arg3: memref<8x4xf32, #tpu.memory_space<vmem>>, %arg4: memref<8x1xf32, #tpu.memory_space<vmem>>, %arg5: memref<8x1xf32, #tpu.memory_space<vmem>>, %arg6: memref<1xf32, #tpu.memory_space<smem>>, %arg7: memref<1x8x256xf32, #tpu.memory_space<vmem>>, %arg8: memref<1x1x256xf32, #tpu.memory_space<vmem>>) attributes {dimension_semantics = [#tpu.dimension_semantics<parallel>, #tpu.dimension_semantics<parallel>], iteration_bounds = array<i64: 2, 1>, scalar_prefetch = 0 : i64, scratch_operands = 0 : i64, tpu.core_type = #tpu.core_type<tc>, window_params = [{transform_indices = @transform_0, window_bounds = array<i64: 1, 4, 256>}, {pipeline_mode = #tpu.pipeline_mode<synchronous>, transform_indices = @transform_1, window_bounds = array<i64: 8, 4>}, {pipeline_mode = #tpu.pipeline_mode<synchronous>, transform_indices = @transform_2, window_bounds = array<i64: 8, 1>}, {pipeline_mode = #tpu.pipeline_mode<synchronous>, transform_indices = @transform_3, window_bounds = array<i64: 8, 1>}, {transform_indices = @transform_4, window_bounds = array<i64: 1>}, {transform_indices = @transform_5, window_bounds = array<i64: 1, 8, 256>}, {transform_indices = @transform_6, window_bounds = array<i64: 1, 1, 256>}]} {
    %c0 = arith.constant 0 : index
    %c0_0 = arith.constant 0 : index
    %c0_1 = arith.constant 0 : index
    %0 = vector.load %arg2[%c0, %c0_0, %c0_1] : memref<1x4x256xf32, #tpu.memory_space<vmem>>, vector<1x4x256xf32>
    %1 = vector.shape_cast %0 : vector<1x4x256xf32> to vector<4x256xf32>
    %c0_2 = arith.constant 0 : index
    %c0_3 = arith.constant 0 : index
    %2 = vector.load %arg3[%c0_2, %c0_3] : memref<8x4xf32, #tpu.memory_space<vmem>>, vector<8x4xf32>
    %cst = arith.constant dense<0.000000e+00> : vector<8x256xf32>
    %3 = tpu.matmul %2, %1, %cst {dimension_numbers = #tpu.dot_dimension_numbers<[1], [0], [0], [1], [0, 0, 1, 1], [], []>} : vector<8x4xf32>, vector<4x256xf32>, vector<8x256xf32> -> vector<8x256xf32>
    %c0_4 = arith.constant 0 : index
    %c0_5 = arith.constant 0 : index
    %4 = vector.load %arg4[%c0_4, %c0_5] : memref<8x1xf32, #tpu.memory_space<vmem>>, vector<8x1xf32>
    %5 = vector.broadcast %4 : vector<8x1xf32> to vector<8x256xf32>
    %6 = arith.addf %3, %5 : vector<8x256xf32>
    %7 = arith.mulf %6, %6 : vector<8x256xf32>
    %cst_6 = arith.constant dense<0.000000e+00> : vector<256xf32>
    %8 = vector.multi_reduction <add>, %7, %cst_6 [0] : vector<8x256xf32> to vector<256xf32>
    %9 = vector.shape_cast %8 : vector<256xf32> to vector<1x256xf32>
    %cst_7 = arith.constant 1.000000e-24 : f32
    %10 = vector.broadcast %cst_7 : f32 to vector<1x256xf32>
    %11 = arith.maximumf %9, %10 : vector<1x256xf32>
    %12 = math.rsqrt %11 : vector<1x256xf32>
    %cst_8 = arith.constant 0.000000e+00 : f32
    %13 = vector.broadcast %cst_8 : f32 to vector<8x256xf32>
    %14 = arith.maximumf %6, %13 : vector<8x256xf32>
    %c0_9 = arith.constant 0 : index
    %c0_10 = arith.constant 0 : index
    %15 = vector.load %arg5[%c0_9, %c0_10] : memref<8x1xf32, #tpu.memory_space<vmem>>, vector<8x1xf32>
    %16 = vector.broadcast %15 : vector<8x1xf32> to vector<8x256xf32>
    %17 = arith.mulf %14, %16 : vector<8x256xf32>
    %cst_11 = arith.constant dense<0.000000e+00> : vector<256xf32>
    %18 = vector.multi_reduction <add>, %17, %cst_11 [0] : vector<8x256xf32> to vector<256xf32>
    %19 = vector.shape_cast %18 : vector<256xf32> to vector<1x256xf32>
    %c0_12 = arith.constant 0 : index
    %20 = memref.load %arg6[%c0_12] : memref<1xf32, #tpu.memory_space<smem>>
    %21 = vector.broadcast %20 : f32 to vector<1x256xf32>
    %22 = arith.addf %19, %21 : vector<1x256xf32>
    %cst_13 = arith.constant 2.000000e+01 : f32
    %23 = vector.broadcast %cst_13 : f32 to vector<1x256xf32>
    %24 = arith.cmpf ogt, %22, %23 : vector<1x256xf32>
    %cst_14 = arith.constant 2.000000e+01 : f32
    %25 = vector.broadcast %cst_14 : f32 to vector<1x256xf32>
    %26 = arith.minimumf %22, %25 : vector<1x256xf32>
    %27 = math.exp %26 : vector<1x256xf32>
    %28 = math.log1p %27 : vector<1x256xf32>
    %29 = arith.select %24, %22, %28 : vector<1x256xi1>, vector<1x256xf32>
    %30 = arith.mulf %29, %12 : vector<1x256xf32>
    %31 = vector.broadcast %30 : vector<1x256xf32> to vector<8x256xf32>
    %32 = arith.mulf %6, %31 : vector<8x256xf32>
    %c0_15 = arith.constant 0 : index
    %c0_16 = arith.constant 0 : index
    %c0_17 = arith.constant 0 : index
    %33 = vector.load %arg7[%c0_15, %c0_16, %c0_17] : memref<1x8x256xf32, #tpu.memory_space<vmem>>, vector<1x8x256xf32>
    %34 = vector.shape_cast %33 : vector<1x8x256xf32> to vector<8x256xf32>
    %35 = vector.shape_cast %32 : vector<8x256xf32> to vector<1x8x256xf32>
    tpu.vector_store %arg7[%c0_15, %c0_16, %c0_17], %35 {strides = array<i32>} : memref<1x8x256xf32, #tpu.memory_space<vmem>>, vector<1x8x256xf32>,
    %c0_18 = arith.constant 0 : index
    %c0_19 = arith.constant 0 : index
    %c0_20 = arith.constant 0 : index
    %36 = vector.load %arg8[%c0_18, %c0_19, %c0_20] : memref<1x1x256xf32, #tpu.memory_space<vmem>>, vector<1x1x256xf32>
    %37 = vector.shape_cast %36 : vector<1x1x256xf32> to vector<1x256xf32>
    %38 = vector.shape_cast %29 : vector<1x256xf32> to vector<1x1x256xf32>
    tpu.vector_store %arg8[%c0_18, %c0_19, %c0_20], %38 {strides = array<i32>} : memref<1x1x256xf32, #tpu.memory_space<vmem>>, vector<1x1x256xf32>,
    return
  }
  func.func @transform_0(%arg0: i32, %arg1: i32) -> (i32, i32, i32) {
    %c0_i32 = arith.constant 0 : i32
    %c0_i32_0 = arith.constant 0 : i32
    return %arg0, %c0_i32, %arg1 : i32, i32, i32
  }
  func.func @transform_1(%arg0: i32, %arg1: i32) -> (i32, i32) {
    %c0_i32 = arith.constant 0 : i32
    %c0_i32_0 = arith.constant 0 : i32
    %c0_i32_1 = arith.constant 0 : i32
    return %c0_i32, %c0_i32_0 : i32, i32
  }
  func.func @transform_2(%arg0: i32, %arg1: i32) -> (i32, i32) {
    %c0_i32 = arith.constant 0 : i32
    %c0_i32_0 = arith.constant 0 : i32
    %c0_i32_1 = arith.constant 0 : i32
    return %c0_i32, %c0_i32_0 : i32, i32
  }
  func.func @transform_3(%arg0: i32, %arg1: i32) -> (i32, i32) {
    %c0_i32 = arith.constant 0 : i32
    %c0_i32_0 = arith.constant 0 : i32
    %c0_i32_1 = arith.constant 0 : i32
    return %c0_i32, %c0_i32_0 : i32, i32
  }
  func.func @transform_4(%arg0: i32, %arg1: i32) -> i32 {
    %c0_i32 = arith.constant 0 : i32
    %c0_i32_0 = arith.constant 0 : i32
    return %c0_i32 : i32
  }
  func.func @transform_5(%arg0: i32, %arg1: i32) -> (i32, i32, i32) {
    %c0_i32 = arith.constant 0 : i32
    %c0_i32_0 = arith.constant 0 : i32
    return %arg0, %c0_i32, %arg1 : i32, i32, i32
  }
  func.func @transform_6(%arg0: i32, %arg1: i32) -> (i32, i32, i32) {
    %c0_i32 = arith.constant 0 : i32
    %c0_i32_0 = arith.constant 0 : i32
    return %arg0, %c0_i32, %arg1 : i32, i32, i32
  }
}

</mosaic_0001>

<bundles_post_ra>
// kernel: spatial_attention_2d.1
= control target key start
LH: loop header
LB: loop body
LE: loop exit
PB: predicated region body
PF: predicated region fallthrough
CT: control target
= control target key end

     0   :  { %s732_s23 = smov 0   ;;  %s734_s24 = smov 0   ;;  %s794_s0 = inlined_call_operand.vmem [shape: f32[2,4,256], index: 0, kind: input, shape index: {}]   ;;  %s795_s1 = inlined_call_operand.vmem [shape: f32[8,4], index: 1, kind: input, shape index: {}]   ;;  %s796_s2 = inlined_call_operand.vmem [shape: f32[8,1], index: 2, kind: input, shape index: {}]   ;;  %s797_s3 = inlined_call_operand.vmem [shape: f32[8,1], index: 3, kind: input, shape index: {}]   ;;  %s798_s4 = inlined_call_operand.<no memory space> [shape: f32[1], index: 4, kind: input, shape index: {}]   ;;  %s799_s5 = inlined_call_operand.vmem [shape: f32[2,8,256], index: 5, kind: output, shape index: {0}]   ;;  %s800_s6 = inlined_call_operand.vmem [shape: f32[2,1,256], index: 6, kind: output, shape index: {1}]  }
   0x1   :  { %12 = sst [smem:[#allocation2]] %s798_s4  ;;  %s736_s25 = smov 0  }
   0x2 LB: > { %s30_s4 = sadd.s32 1, %s687_s24  ;;  %p617_p0 = scmp.ge.s32.totalorder %s691_s25, 1  ;;  %s691_s25 = sphi %s736_s25, %s18_s25   ;;  %s687_s24 = sphi %s734_s24, %s802_s24   ;;  %s683_s23 = sphi %s732_s23, %s801_s23  }
   0x3   : > { %p32_p1 = scmp.ge.s32.totalorder %s30_s4, 2  ;;  %p239_p2 = scmp.lt.s32.totalorder %s691_s25, 3 }
   0x5   : > { %s804_s4 = smov (%p32_p1, %s30_s4), 0  ;;  %p240_p3 = pnand %p617_p0, %p239_p2 }
   0x6   : > { %p286_p4 = scmp.lt.s32.totalorder (!%p240_p3), %s683_s23, 1  ;;  %s433_s12 = sld [smem:[#allocation2]] (!%p240_p3) }
   0x7   : > { %243 = sbr.rel (%p240_p3) target bundleno = 202 (0xca), region = 40 }
   0xc   : > { %v316_v0 = vld [vmem:[%s796_s2] sm:$0xff]  ;;  %v693_v1 = vmov 0   ;;  %s806_s23 = smov (!%p286_p4, %s683_s23), 1  ;;  %vm330_vm0 = vcmask 1043456   ;;  %vm326_vm1 = vcmask 31744   ;;  %v434_v41 = vstv %s433_s12 }
   0xd   : > { %656 = vset.pattern.permute.xlu0 %v693_v1  ;;  %s629_s28 = sshll.u32 %s806_s23, 3  ;;  %v413_v3 = vld [vmem:[%s797_s3] sm:$0xff]  ;;  %s630_s13 = sshll.u32 %s806_s23, 4  ;;  %vm474_vm12 = vcmask 1040384  }
   0xe   : > { %319 = vperm.xlu0 %656, %v316_v0   ;;  %s293_s7 = scalar_lea.vmem %s794_s0, %s629_s28  ;;  %v315_v4 = vld [vmem:[%s795_s1] sm:$0xff]  ;;  %s622_s14 = sshll.u32 %s806_s23, 1 }
   0xf   : > { %v314_v2 = vld [vmem:[%s293_s7] sm:$0xff]  ;;  %s303_s17 = scalar_lea.vmem %s799_s5, %s630_s13  ;;  %s312_s20 = scalar_lea.vmem %s800_s6, %s622_s14 }
  0x10   : > { %323 = vst [vmem:[#allocation1] ss:$2 sm:$0xff] %v314_v2 }
  0x16   : > { %416 = vperm.xlu0 %656, %v413_v3  }
  0x17   : > { %v324_v5 = vld.sshfl [vmem:[#allocation1] sm:$0xff pattern:$0x75316420]  ;;  %v325_v6 = vld.sshfl [vmem:[#allocation1 + $0x8] sm:$0xff pattern:$0x75316420] }
  0x18   : > { %623 = vmatpush.msk.msra.mxu0 %vm330_vm0, %v324_v5  ;;  %625 = vmatpush.msk.msra.mxu1 %vm330_vm0, %v325_v6 }
  0x19   : > { %624 = vmatmul.msk.f32.vlgmr.msra.gmra.mxu0 %vm326_vm1, %v315_v4  ;;  %626 = vmatmul.msk.f32.vlgmr.msra.gmra.mxu1 %vm326_vm1, %v315_v4 }
  0x80   : > { %v320_v7 = vpop.permute.xlu0 %319 }
  0x88   : > { %v417_v16 = vpop.permute.xlu0 %416 }
  0x96   : > { %v352_v8 = vpop.f32.mrf.mxu0  ;;  %v372_v9 = vpop.f32.mrf.mxu1 }
  0x97   : > { %v765_v10 = vadd.f32 %v352_v8, %v320_v7  ;;  %v767_v11 = vadd.f32 %v372_v9, %v320_v7 }
  0x99   : > { %v375_v12 = vmul.f32 %v765_v10, %v765_v10  ;;  %v411_v13 = vmax.f32 %v765_v10, 0.0  ;;  %v376_v14 = vmul.f32 %v767_v11, %v767_v11  ;;  %v412_v15 = vmax.f32 %v767_v11, 0.0 }
  0x9b   : > { %v377_v17 = vrot.slane %v375_v12, 4  ;;  %v419_v18 = vmul.f32 %v417_v16, %v411_v13  ;;  %v383_v19 = vrot.slane %v376_v14, 4  ;;  %v420_v20 = vmul.f32 %v417_v16, %v412_v15 }
  0x9d   : > { %v378_v21 = vadd.f32 %v377_v17, %v375_v12  ;;  %v421_v22 = vrot.slane %v419_v18, 4  ;;  %v384_v23 = vadd.f32 %v383_v19, %v376_v14  ;;  %v427_v24 = vrot.slane %v420_v20, 4 }
  0x9e   : > { %v477_v12 = vlaneseq }
  0x9f   : > { %v379_v25 = vrot.slane %v378_v21, 2  ;;  %v422_v26 = vadd.f32 %v421_v22, %v419_v18  ;;  %v385_v27 = vrot.slane %v384_v23, 2  ;;  %v428_v28 = vadd.f32 %v427_v24, %v420_v20 }
  0xa0   : > { %vm479_vm13 = vcmp.lt.s32.totalorder %v477_v12, 256 }
  0xa1   : > { %v380_v29 = vadd.f32 %v379_v25, %v378_v21  ;;  %v423_v30 = vrot.slane %v422_v26, 2  ;;  %v386_v31 = vadd.f32 %v385_v27, %v384_v23  ;;  %v429_v32 = vrot.slane %v428_v28, 2 }
  0xa3   : > { %v381_v33 = vrot.slane %v380_v29, 1  ;;  %v424_v34 = vadd.f32 %v423_v30, %v422_v26  ;;  %v387_v35 = vrot.slane %v386_v31, 1  ;;  %v430_v36 = vadd.f32 %v429_v32, %v428_v28 }
  0xa5   : > { %v382_v37 = vadd.f32 %v381_v33, %v380_v29  ;;  %v425_v38 = vrot.slane %v424_v34, 1  ;;  %v388_v39 = vadd.f32 %v387_v35, %v386_v31  ;;  %v431_v40 = vrot.slane %v430_v36, 1 }
  0xa7   : > { %v389_v42 = vmax.f32 %v382_v37, 1e-24  ;;  %v426_v43 = vadd.f32 %v425_v38, %v424_v34  ;;  %v390_v44 = vmax.f32 %v388_v39, 1e-24  ;;  %v432_v45 = vadd.f32 %v431_v40, %v430_v36 }
  0xa9   : > { %657 = vrsqrt.f32 %v389_v42  ;;  %v435_v46 = vadd.f32 %v434_v41, %v426_v43  ;;  %v436_v47 = vadd.f32 %v434_v41, %v432_v45  ;;  %vm397_vm4 = vweird.f32 %v389_v42 }
  0xaa   : > { %659 = vrsqrt.f32 %v390_v44  ;;  %vm407_vm8 = vweird.f32 %v390_v44 }
  0xab   : > { %v439_v48 = vmin.f32 %v435_v46, 20.0  ;;  %v440_v49 = vmin.f32 %v436_v47, 20.0  ;;  %vm437_vm7 = vcmp.gt.f32.partialorder %v435_v46, 20.0  ;;  %vm438_vm11 = vcmp.gt.f32.partialorder %v436_v47, 20.0 }
  0xad   : > { %v441_v50 = vmul.f32 1.442695, %v439_v48  ;;  %v443_v51 = vmul.f32 1.442695, %v440_v49 }
  0xaf   : > { %v658_v52 = vpop.eup %657  ;;  %661 = vpow2.f32 %v441_v50 }
  0xb0   : > { %v660_v53 = vpop.eup %659  ;;  %v392_v54 = vmul.f32 %v658_v52, %v389_v42  ;;  %663 = vpow2.f32 %v443_v51  ;;  %vm398_vm2 = vweird.f32 %v658_v52 }
  0xb1   : > { %v402_v55 = vmul.f32 %v660_v53, %v390_v44  ;;  %vm408_vm3 = vweird.f32 %v660_v53  ;;  %vm399_vm6 = vmor %vm397_vm4, %vm398_vm2 }
  0xb2   : > { %v393_v56 = vmul.f32 %v658_v52, %v392_v54  ;;  %vm409_vm10 = vmor %vm407_vm8, %vm408_vm3 }
  0xb3   : > { %v403_v57 = vmul.f32 %v660_v53, %v402_v55 }
  0xb4   : > { %v394_v60 = vmul.f32 0.5, %v393_v56 }
  0xb5   : > { %v662_v58 = vpop.eup %661  ;;  %v404_v63 = vmul.f32 0.5, %v403_v57 }
  0xb6   : > { %v664_v59 = vpop.eup %663  ;;  %v445_v61 = vadd.f32 1.0, %v662_v58  ;;  %v448_v62 = vmul.f32 -0.5, %v662_v58  ;;  %v395_v2 = vsub.f32 1.5, %v394_v60  ;;  %v451_v5 = vand.u32 2147483647, %v662_v58 }
  0xb7   : > { %v454_v0 = vadd.f32 1.0, %v664_v59  ;;  %v457_v1 = vmul.f32 -0.5, %v664_v59  ;;  %v405_v4 = vsub.f32 1.5, %v404_v63  ;;  %v460_v7 = vand.u32 2147483647, %v664_v59 }
  0xb8   : > { %665 = vlog2.f32 %v445_v61  ;;  %v449_v3 = vadd.f32 1.0, %v448_v62  ;;  %v396_v9 = vmul.f32 %v658_v52, %v395_v2  ;;  %vm452_vm5 = vcmp.lt.f32.partialorder %v451_v5, 0.0004427343 }
  0xb9   : > { %667 = vlog2.f32 %v454_v0  ;;  %v458_v6 = vadd.f32 1.0, %v457_v1  ;;  %v406_v16 = vmul.f32 %v660_v53, %v405_v4  ;;  %vm461_vm9 = vcmp.lt.f32.partialorder %v460_v7, 0.0004427343 }
  0xba   : > { %v450_v15 = vmul.f32 %v662_v58, %v449_v3  ;;  %v400_v20 = vsel %vm399_vm6, %v658_v52, %v396_v9 }
  0xbb   : > { %v459_v18 = vmul.f32 %v664_v59, %v458_v6  ;;  %v410_v24 = vsel %vm409_vm10, %v660_v53, %v406_v16 }
  0xbe   : > { %v666_v8 = vpop.eup %665 }
  0xbf   : > { %v668_v13 = vpop.eup %667  ;;  %v447_v14 = vmul.f32 0.6931472, %v666_v8 }
  0xc0   : > { %v456_v17 = vmul.f32 0.6931472, %v668_v13 }
  0xc1   : > { %v453_v19 = vsel %vm452_vm5, %v450_v15, %v447_v14 }
  0xc2   : > { %v463_v21 = vsel %vm437_vm7, %v435_v46, %v453_v19  ;;  %v462_v22 = vsel %vm461_vm9, %v459_v18, %v456_v17 }
  0xc3   : > { %v465_v23 = vmul.f32 %v463_v21, %v400_v20  ;;  %v464_v25 = vsel %vm438_vm11, %v436_v47, %v462_v22 }
  0xc4   : > { %v466_v26 = vmul.f32 %v464_v25, %v410_v24  ;;  %v473_v27 = vrot.slane %v464_v25, 7 }
  0xc5   : > { %v467_v28 = vmul.f32 %v465_v23, %v765_v10 }
  0xc6   : > { %v468_v29 = vmul.f32 %v466_v26, %v767_v11  ;;  %v475_v30 = vsel %vm474_vm12, %v463_v21, %v473_v27 }
  0xc7   : > { %469 = vst [vmem:[%s303_s17] sm:$0xff] %v467_v28 }
  0xc8   : > { %470 = vst [vmem:[%s303_s17 + $0x8] sm:$0xff] %v468_v29 }
  0xc9   : > { %481 = vst.msk [vmem:[%s312_s20] sm:$0x3] %vm479_vm13, %v475_v30 }
  0xca PF: > { %s18_s25 = sadd.s32 1, %s691_s25   ;;  %s801_s23 = smov %s687_s24 }
  0xcb   : > { %p15_p5 = scmp.ge.s32.totalorder %s18_s25, 4   ;;  %s802_s24 = smov %s804_s4 }
  0xcd   :  { %17 = sbr.rel (!%p15_p5) target bundleno = 2 (0x2), region = 82 }

// kernel: spatial_attention_2d.1
= control target key start
LH: loop header
LB: loop body
LE: loop exit
PB: predicated region body
PF: predicated region fallthrough
CT: control target
= control target key end

     0   :  { %s732_s23 = smov 0   ;;  %s734_s24 = smov 0   ;;  %s794_s0 = inlined_call_operand.vmem [shape: f32[2,4,256], index: 0, kind: input, shape index: {}]   ;;  %s795_s1 = inlined_call_operand.vmem [shape: f32[8,4], index: 1, kind: input, shape index: {}]   ;;  %s796_s2 = inlined_call_operand.vmem [shape: f32[8,1], index: 2, kind: input, shape index: {}]   ;;  %s797_s3 = inlined_call_operand.vmem [shape: f32[8,1], index: 3, kind: input, shape index: {}]   ;;  %s798_s4 = inlined_call_operand.<no memory space> [shape: f32[1], index: 4, kind: input, shape index: {}]   ;;  %s799_s5 = inlined_call_operand.vmem [shape: f32[2,8,256], index: 5, kind: output, shape index: {0}]   ;;  %s800_s6 = inlined_call_operand.vmem [shape: f32[2,1,256], index: 6, kind: output, shape index: {1}]  }
   0x1   :  { %12 = sst [smem:[#allocation2]] %s798_s4  ;;  %s736_s25 = smov 0  }
   0x2 LB: > { %s30_s4 = sadd.s32 1, %s687_s24  ;;  %p617_p0 = scmp.ge.s32.totalorder %s691_s25, 1  ;;  %s691_s25 = sphi %s736_s25, %s18_s25   ;;  %s687_s24 = sphi %s734_s24, %s802_s24   ;;  %s683_s23 = sphi %s732_s23, %s801_s23  }
   0x3   : > { %p32_p1 = scmp.ge.s32.totalorder %s30_s4, 2  ;;  %p239_p2 = scmp.lt.s32.totalorder %s691_s25, 3 }
   0x5   : > { %s804_s4 = smov (%p32_p1, %s30_s4), 0  ;;  %p240_p3 = pnand %p617_p0, %p239_p2 }
   0x6   : > { %p286_p4 = scmp.lt.s32.totalorder (!%p240_p3), %s683_s23, 1  ;;  %s433_s12 = sld [smem:[#allocation2]] (!%p240_p3) }
   0x7   : > { %243 = sbr.rel (%p240_p3) target bundleno = 202 (0xca), region = 40 }
   0xc   : > { %v316_v0 = vld [vmem:[%s796_s2] sm:$0xff]  ;;  %v693_v1 = vmov 0   ;;  %s806_s23 = smov (!%p286_p4, %s683_s23), 1  ;;  %vm330_vm0 = vcmask 1043456   ;;  %vm326_vm1 = vcmask 31744   ;;  %v434_v41 = vstv %s433_s12 }
   0xd   : > { %656 = vset.pattern.permute.xlu0 %v693_v1  ;;  %s629_s28 = sshll.u32 %s806_s23, 3  ;;  %v413_v3 = vld [vmem:[%s797_s3] sm:$0xff]  ;;  %s630_s13 = sshll.u32 %s806_s23, 4  ;;  %vm474_vm12 = vcmask 1040384  }
   0xe   : > { %319 = vperm.xlu0 %656, %v316_v0   ;;  %s293_s7 = scalar_lea.vmem %s794_s0, %s629_s28  ;;  %v315_v4 = vld [vmem:[%s795_s1] sm:$0xff]  ;;  %s622_s14 = sshll.u32 %s806_s23, 1 }
   0xf   : > { %v314_v2 = vld [vmem:[%s293_s7] sm:$0xff]  ;;  %s303_s17 = scalar_lea.vmem %s799_s5, %s630_s13  ;;  %s312_s20 = scalar_lea.vmem %s800_s6, %s622_s14 }
  0x10   : > { %323 = vst [vmem:[#allocation1] ss:$2 sm:$0xff] %v314_v2 }
  0x16   : > { %416 = vperm.xlu0 %656, %v413_v3  }
  0x17   : > { %v324_v5 = vld.sshfl [vmem:[#allocation1] sm:$0xff pattern:$0x75316420]  ;;  %v325_v6 = vld.sshfl [vmem:[#allocation1 + $0x8] sm:$0xff pattern:$0x75316420] }
  0x18   : > { %623 = vmatpush.msk.msra.mxu0 %vm330_vm0, %v324_v5  ;;  %625 = vmatpush.msk.msra.mxu1 %vm330_vm0, %v325_v6 }
  0x19   : > { %624 = vmatmul.msk.f32.vlgmr.msra.gmra.mxu0 %vm326_vm1, %v315_v4  ;;  %626 = vmatmul.msk.f32.vlgmr.msra.gmra.mxu1 %vm326_vm1, %v315_v4 }
  0x80   : > { %v320_v7 = vpop.permute.xlu0 %319 }
  0x88   : > { %v417_v16 = vpop.permute.xlu0 %416 }
  0x96   : > { %v352_v8 = vpop.f32.mrf.mxu0  ;;  %v372_v9 = vpop.f32.mrf.mxu1 }
  0x97   : > { %v765_v10 = vadd.f32 %v352_v8, %v320_v7  ;;  %v767_v11 = vadd.f32 %v372_v9, %v320_v7 }
  0x99   : > { %v375_v12 = vmul.f32 %v765_v10, %v765_v10  ;;  %v411_v13 = vmax.f32 %v765_v10, 0.0  ;;  %v376_v14 = vmul.f32 %v767_v11, %v767_v11  ;;  %v412_v15 = vmax.f32 %v767_v11, 0.0 }
  0x9b   : > { %v377_v17 = vrot.slane %v375_v12, 4  ;;  %v419_v18 = vmul.f32 %v417_v16, %v411_v13  ;;  %v383_v19 = vrot.slane %v376_v14, 4  ;;  %v420_v20 = vmul.f32 %v417_v16, %v412_v15 }
  0x9d   : > { %v378_v21 = vadd.f32 %v377_v17, %v375_v12  ;;  %v421_v22 = vrot.slane %v419_v18, 4  ;;  %v384_v23 = vadd.f32 %v383_v19, %v376_v14  ;;  %v427_v24 = vrot.slane %v420_v20, 4 }
  0x9e   : > { %v477_v12 = vlaneseq }
  0x9f   : > { %v379_v25 = vrot.slane %v378_v21, 2  ;;  %v422_v26 = vadd.f32 %v421_v22, %v419_v18  ;;  %v385_v27 = vrot.slane %v384_v23, 2  ;;  %v428_v28 = vadd.f32 %v427_v24, %v420_v20 }
  0xa0   : > { %vm479_vm13 = vcmp.lt.s32.totalorder %v477_v12, 256 }
  0xa1   : > { %v380_v29 = vadd.f32 %v379_v25, %v378_v21  ;;  %v423_v30 = vrot.slane %v422_v26, 2  ;;  %v386_v31 = vadd.f32 %v385_v27, %v384_v23  ;;  %v429_v32 = vrot.slane %v428_v28, 2 }
  0xa3   : > { %v381_v33 = vrot.slane %v380_v29, 1  ;;  %v424_v34 = vadd.f32 %v423_v30, %v422_v26  ;;  %v387_v35 = vrot.slane %v386_v31, 1  ;;  %v430_v36 = vadd.f32 %v429_v32, %v428_v28 }
  0xa5   : > { %v382_v37 = vadd.f32 %v381_v33, %v380_v29  ;;  %v425_v38 = vrot.slane %v424_v34, 1  ;;  %v388_v39 = vadd.f32 %v387_v35, %v386_v31  ;;  %v431_v40 = vrot.slane %v430_v36, 1 }
  0xa7   : > { %v389_v42 = vmax.f32 %v382_v37, 1e-24  ;;  %v426_v43 = vadd.f32 %v425_v38, %v424_v34  ;;  %v390_v44 = vmax.f32 %v388_v39, 1e-24  ;;  %v432_v45 = vadd.f32 %v431_v40, %v430_v36 }
  0xa9   : > { %657 = vrsqrt.f32 %v389_v42  ;;  %v435_v46 = vadd.f32 %v434_v41, %v426_v43  ;;  %v436_v47 = vadd.f32 %v434_v41, %v432_v45  ;;  %vm397_vm4 = vweird.f32 %v389_v42 }
  0xaa   : > { %659 = vrsqrt.f32 %v390_v44  ;;  %vm407_vm8 = vweird.f32 %v390_v44 }
  0xab   : > { %v439_v48 = vmin.f32 %v435_v46, 20.0  ;;  %v440_v49 = vmin.f32 %v436_v47, 20.0  ;;  %vm437_vm7 = vcmp.gt.f32.partialorder %v435_v46, 20.0  ;;  %vm438_vm11 = vcmp.gt.f32.partialorder %v436_v47, 20.0 }
  0xad   : > { %v441_v50 = vmul.f32 1.442695, %v439_v48  ;;  %v443_v51 = vmul.f32 1.442695, %v440_v49 }
  0xaf   : > { %v658_v52 = vpop.eup %657  ;;  %661 = vpow2.f32 %v441_v50 }
  0xb0   : > { %v660_v53 = vpop.eup %659  ;;  %v392_v54 = vmul.f32 %v658_v52, %v389_v42  ;;  %663 = vpow2.f32 %v443_v51  ;;  %vm398_vm2 = vweird.f32 %v658_v52 }
  0xb1   : > { %v402_v55 = vmul.f32 %v660_v53, %v390_v44  ;;  %vm408_vm3 = vweird.f32 %v660_v53  ;;  %vm399_vm6 = vmor %vm397_vm4, %vm398_vm2 }
  0xb2   : > { %v393_v56 = vmul.f32 %v658_v52, %v392_v54  ;;  %vm409_vm10 = vmor %vm407_vm8, %vm408_vm3 }
  0xb3   : > { %v403_v57 = vmul.f32 %v660_v53, %v402_v55 }
  0xb4   : > { %v394_v60 = vmul.f32 0.5, %v393_v56 }
  0xb5   : > { %v662_v58 = vpop.eup %661  ;;  %v404_v63 = vmul.f32 0.5, %v403_v57 }
  0xb6   : > { %v664_v59 = vpop.eup %663  ;;  %v445_v61 = vadd.f32 1.0, %v662_v58  ;;  %v448_v62 = vmul.f32 -0.5, %v662_v58  ;;  %v395_v2 = vsub.f32 1.5, %v394_v60  ;;  %v451_v5 = vand.u32 2147483647, %v662_v58 }
  0xb7   : > { %v454_v0 = vadd.f32 1.0, %v664_v59  ;;  %v457_v1 = vmul.f32 -0.5, %v664_v59  ;;  %v405_v4 = vsub.f32 1.5, %v404_v63  ;;  %v460_v7 = vand.u32 2147483647, %v664_v59 }
  0xb8   : > { %665 = vlog2.f32 %v445_v61  ;;  %v449_v3 = vadd.f32 1.0, %v448_v62  ;;  %v396_v9 = vmul.f32 %v658_v52, %v395_v2  ;;  %vm452_vm5 = vcmp.lt.f32.partialorder %v451_v5, 0.0004427343 }
  0xb9   : > { %667 = vlog2.f32 %v454_v0  ;;  %v458_v6 = vadd.f32 1.0, %v457_v1  ;;  %v406_v16 = vmul.f32 %v660_v53, %v405_v4  ;;  %vm461_vm9 = vcmp.lt.f32.partialorder %v460_v7, 0.0004427343 }
  0xba   : > { %v450_v15 = vmul.f32 %v662_v58, %v449_v3  ;;  %v400_v20 = vsel %vm399_vm6, %v658_v52, %v396_v9 }
  0xbb   : > { %v459_v18 = vmul.f32 %v664_v59, %v458_v6  ;;  %v410_v24 = vsel %vm409_vm10, %v660_v53, %v406_v16 }
  0xbe   : > { %v666_v8 = vpop.eup %665 }
  0xbf   : > { %v668_v13 = vpop.eup %667  ;;  %v447_v14 = vmul.f32 0.6931472, %v666_v8 }
  0xc0   : > { %v456_v17 = vmul.f32 0.6931472, %v668_v13 }
  0xc1   : > { %v453_v19 = vsel %vm452_vm5, %v450_v15, %v447_v14 }
  0xc2   : > { %v463_v21 = vsel %vm437_vm7, %v435_v46, %v453_v19  ;;  %v462_v22 = vsel %vm461_vm9, %v459_v18, %v456_v17 }
  0xc3   : > { %v465_v23 = vmul.f32 %v463_v21, %v400_v20  ;;  %v464_v25 = vsel %vm438_vm11, %v436_v47, %v462_v22 }
  0xc4   : > { %v466_v26 = vmul.f32 %v464_v25, %v410_v24  ;;  %v473_v27 = vrot.slane %v464_v25, 7 }
  0xc5   : > { %v467_v28 = vmul.f32 %v465_v23, %v765_v10 }
  0xc6   : > { %v468_v29 = vmul.f32 %v466_v26, %v767_v11  ;;  %v475_v30 = vsel %vm474_vm12, %v463_v21, %v473_v27 }
  0xc7   : > { %469 = vst [vmem:[%s303_s17] sm:$0xff] %v467_v28 }
  0xc8   : > { %470 = vst [vmem:[%s303_s17 + $0x8] sm:$0xff] %v468_v29 }
  0xc9   : > { %481 = vst.msk [vmem:[%s312_s20] sm:$0x3] %vm479_vm13, %v475_v30 }
  0xca PF: > { %s18_s25 = sadd.s32 1, %s691_s25   ;;  %s801_s23 = smov %s687_s24 }
  0xcb   : > { %p15_p5 = scmp.ge.s32.totalorder %s18_s25, 4   ;;  %s802_s24 = smov %s804_s4 }
  0xcd   :  { %17 = sbr.rel (!%p15_p5) target bundleno = 2 (0x2), region = 82 }

</bundles_post_ra>
